<compile_context>
chip_gen: v7x
topology: tpu7x:2x2x1
jax: 0.10.0
libtpu: 0.0.40
codegen_flags: <defaults>
</compile_context>

<pallas_src>
import functools

import numpy as np
import jax
import jax.numpy as jnp
from jax.experimental import pallas as pl
from jax.experimental.pallas import tpu as pltpu


# ----------------------------- static geometry -----------------------------
_COUT = 4            # num_kernels
_K = 3               # kernel_size
_H = 16              # input_dim
_HP = 7              # pooled spatial size: ((16-3+1) - 2)//2 + 1
_HC2 = 5             # conv2 output spatial: 7 - 3 + 1
_SEG = _HP * _HP     # 49 pooled positions per sample (lane segment / sample)
_TW = (_HC2 - 1) * _HP + _HC2   # 33: lane span per (sample, channel) for fc1
_SHIFT_MAX = (_K - 1) * (_HP + 1)  # 16: largest conv2 lane shift
_NFC1 = 32
_NCLS = 10

# fc1 weight re-indexing: the kernel's conv2 output column t = i*7 + j (of a
# 33-wide per-sample, per-channel lane slab); torch's NCHW flatten feature is
# o*25 + i*5 + j.  Columns with j > 4 are garbage lanes -> weight 0.
_FC1_SRC = np.zeros((_COUT, _TW), np.int32)
_FC1_MSK = np.zeros((_COUT, _TW), np.float32)
for _o in range(_COUT):
    for _t in range(_TW):
        _i, _j = divmod(_t, _HP)
        if _i < _HC2 and _j < _HC2:
            _FC1_SRC[_o, _t] = _o * _HC2 * _HC2 + _i * _HC2 + _j
            _FC1_MSK[_o, _t] = 1.0


# ------------------------------ fused kernel -------------------------------
def _lenet5_kernel(p1_ref, w1_ref, b1_ref, w2_ref, b2_ref,
                   fc1w_ref, fc1b_ref, fc2w_ref, fc2b_ref, out_ref,
                   *, n_batch):
    m1 = _SEG * n_batch          # pooled slab lane width (49*N)
    m2 = m1 - _SHIFT_MAX         # conv2 slab lane width (49*N - 16)

    # ---- conv1 + ReLU + MaxPool2d(2,2), fused over the 4 pooling phases ----
    # p1_ref[p]: (9, 49*N) per-phase im2col (K*K on sublanes, (n,a,b) on lanes).
    w1 = w1_ref[...]                                    # (4, 9)
    b1 = b1_ref[...]                                    # (4, 1)
    pooled = None                                       # (4, 49*N) lane-dense
    for p in range(4):
        z = jnp.dot(w1, p1_ref[p], preferred_element_type=jnp.float32)
        z = jnp.maximum(z + b1, 0.0)
        pooled = z if pooled is None else jnp.maximum(pooled, z)

    # ---- conv2 + ReLU: 9 lane-shifted (4,4)@(4,m2) dots on the flat slab ---
    # Output column n*49 + i*7 + j (i,j in 0..4) holds conv2[n, :, i, j];
    # the other columns are finite garbage masked out by the fc1 weights.
    acc = None
    for k in range(_K * _K):
        di, dj = divmod(k, _K)
        d = di * _HP + dj                               # static lane shift
        t = jnp.dot(w2_ref[k], pooled[:, d:d + m2],
                    preferred_element_type=jnp.float32)
        acc = t if acc is None else acc + t
    c2 = jnp.maximum(acc + b2_ref[...], 0.0)            # (4, m2)

    # ---- dense stack; NCHW flatten folded into the re-indexed fc1 weight ---
    fc1b = fc1b_ref[...]                                # (1, 32)
    fc2w = fc2w_ref[...]                                # (32, 10)
    fc2b = fc2b_ref[...]                                # (1, 10)
    for n in range(n_batch):
        h = fc1b
        for o in range(_COUT):
            piece = c2[o:o + 1, n * _SEG:n * _SEG + _TW]        # (1, 33)
            h = h + jnp.dot(piece, fc1w_ref[o],
                            preferred_element_type=jnp.float32)  # (1, 32)
        h = jnp.maximum(h, 0.0)
        logits = jnp.dot(h, fc2w, preferred_element_type=jnp.float32) + fc2b
        out_ref[pl.ds(n, 1), :] = logits


# ------------------------------ jit'd wrapper -------------------------------
@jax.jit
def lenet5_forward(x_nchw, params):
    n = x_nchw.shape[0]
    x = x_nchw[:, 0].astype(jnp.float32)                # (N, 16, 16), Cin=1

    # Per-pooling-phase transposed im2col for conv1 (depends only on the raw
    # input): phase (pi,pj), tap (di,dj), lane m = n*49 + a*7 + b.
    phases = []
    for pi in range(2):
        for pj in range(2):
            taps = []
            for di in range(_K):
                for dj in range(_K):
                    r0, c0 = pi + di, pj + dj
                    s = x[:, r0:r0 + 2 * _HP - 1:2, c0:c0 + 2 * _HP - 1:2]
                    taps.append(s.reshape(1, n * _SEG))         # (1, 49*N)
            phases.append(jnp.concatenate(taps, axis=0))        # (9, 49*N)
    p1 = jnp.stack(phases, axis=0)                              # (4, 9, 49*N)

    # Weight preprocessing (pure relayout, folded by XLA at trace time).
    w1 = params["conv1_w"].reshape(_COUT, _K * _K).astype(jnp.float32)
    b1 = params["conv1_b"].reshape(_COUT, 1).astype(jnp.float32)
    w2 = jnp.transpose(params["conv2_w"], (2, 3, 0, 1)).reshape(
        _K * _K, _COUT, _COUT).astype(jnp.float32)              # (9, 4, 4)
    b2 = params["conv2_b"].reshape(_COUT, 1).astype(jnp.float32)
    fc1w = (params["fc1_w"][_FC1_SRC] *
            _FC1_MSK[..., None]).astype(jnp.float32)            # (4, 33, 32)
    fc1b = params["fc1_b"].reshape(1, _NFC1).astype(jnp.float32)
    fc2w = params["fc2_w"].astype(jnp.float32)                  # (32, 10)
    fc2b = params["fc2_b"].reshape(1, _NCLS).astype(jnp.float32)

    kernel = functools.partial(_lenet5_kernel, n_batch=n)
    return pl.pallas_call(
        kernel,
        out_shape=jax.ShapeDtypeStruct((n, _NCLS), jnp.float32),
        grid=(1,),
        in_specs=[
            pl.BlockSpec((4, _K * _K, n * _SEG), lambda i: (0, 0, 0)),
            pl.BlockSpec((_COUT, _K * _K), lambda i: (0, 0)),
            pl.BlockSpec((_COUT, 1), lambda i: (0, 0)),
            pl.BlockSpec((_K * _K, _COUT, _COUT), lambda i: (0, 0, 0)),
            pl.BlockSpec((_COUT, 1), lambda i: (0, 0)),
            pl.BlockSpec((_COUT, _TW, _NFC1), lambda i: (0, 0, 0)),
            pl.BlockSpec((1, _NFC1), lambda i: (0, 0)),
            pl.BlockSpec((_NFC1, _NCLS), lambda i: (0, 0)),
            pl.BlockSpec((1, _NCLS), lambda i: (0, 0)),
        ],
        out_specs=pl.BlockSpec((n, _NCLS), lambda i: (0, 0)),
        compiler_params=pltpu.CompilerParams(
            dimension_semantics=("arbitrary",)),
    )(p1, w1, b1, w2, b2, fc1w, fc1b, fc2w, fc2b)


# --------------------------- pure-JAX reference -----------------------------
def reference_forward(x_nchw, params):
    hp = jax.lax.Precision.HIGHEST
    y = jax.lax.conv_general_dilated(
        x_nchw, params["conv1_w"], (1, 1), "VALID",
        dimension_numbers=("NCHW", "OIHW", "NCHW"), precision=hp)
    y = jnp.maximum(y + params["conv1_b"][None, :, None, None], 0.0)
    y = jax.lax.reduce_window(y, -jnp.inf, jax.lax.max,
                              (1, 1, 2, 2), (1, 1, 2, 2), "VALID")
    y = jax.lax.conv_general_dilated(
        y, params["conv2_w"], (1, 1), "VALID",
        dimension_numbers=("NCHW", "OIHW", "NCHW"), precision=hp)
    y = jnp.maximum(y + params["conv2_b"][None, :, None, None], 0.0)
    y = y.reshape(y.shape[0], -1)
    y = jnp.maximum(jnp.dot(y, params["fc1_w"], precision=hp)
                    + params["fc1_b"], 0.0)
    y = jnp.dot(y, params["fc2_w"], precision=hp) + params["fc2_b"]
    return y


# ---------------------------------- main ------------------------------------
def init_params(key):
    ks = jax.random.split(key, 8)
    return {
        "conv1_w": 0.2 * jax.random.normal(ks[0], (4, 1, 3, 3), jnp.float32),
        "conv1_b": 0.1 * jax.random.normal(ks[1], (4,), jnp.float32),
        "conv2_w": 0.2 * jax.random.normal(ks[2], (4, 4, 3, 3), jnp.float32),
        "conv2_b": 0.1 * jax.random.normal(ks[3], (4,), jnp.float32),
        "fc1_w": 0.1 * jax.random.normal(ks[4], (100, 32), jnp.float32),
        "fc1_b": 0.1 * jax.random.normal(ks[5], (32,), jnp.float32),
        "fc2_w": 0.1 * jax.random.normal(ks[6], (32, 10), jnp.float32),
        "fc2_b": 0.1 * jax.random.normal(ks[7], (10,), jnp.float32),
    }


if __name__ == "__main__":
    key = jax.random.PRNGKey(0)
    kx, kp = jax.random.split(key)
    # batch=2, 1 input channel, 16x16 spatial (NCHW, as PyTorch Conv2d expects)
    x = jax.random.normal(kx, (2, 1, 16, 16), jnp.float32)
    params = init_params(kp)

    out = jax.block_until_ready(lenet5_forward(x, params))
    assert out.shape == (2, 10), out.shape

    ref = jax.block_until_ready(reference_forward(x, params))
    assert jnp.allclose(out, ref, atol=2e-3, rtol=2e-3), (
        float(jnp.max(jnp.abs(out - ref))))

    print("KERNEL_OK")
</pallas_src>

<mosaic_0001>
module attributes {stable_mosaic.version = 11 : i64} {
  func.func @_lenet5_kernel(%arg0: i32, %arg1: memref<4x9x98xf32, #tpu.memory_space<vmem>>, %arg2: memref<4x9xf32, #tpu.memory_space<vmem>>, %arg3: memref<4x1xf32, #tpu.memory_space<vmem>>, %arg4: memref<9x4x4xf32, #tpu.memory_space<vmem>>, %arg5: memref<4x1xf32, #tpu.memory_space<vmem>>, %arg6: memref<4x33x32xf32, #tpu.memory_space<vmem>>, %arg7: memref<1x32xf32, #tpu.memory_space<vmem>>, %arg8: memref<32x10xf32, #tpu.memory_space<vmem>>, %arg9: memref<1x10xf32, #tpu.memory_space<vmem>>, %arg10: memref<2x10xf32, #tpu.memory_space<vmem>>) attributes {dimension_semantics = [#tpu.dimension_semantics<arbitrary>], iteration_bounds = array<i64: 1>, scalar_prefetch = 0 : i64, scratch_operands = 0 : i64, tpu.core_type = #tpu.core_type<tc>, window_params = [{pipeline_mode = #tpu.pipeline_mode<synchronous>, transform_indices = @transform_0, window_bounds = array<i64: 4, 9, 98>}, {pipeline_mode = #tpu.pipeline_mode<synchronous>, transform_indices = @transform_1, window_bounds = array<i64: 4, 9>}, {pipeline_mode = #tpu.pipeline_mode<synchronous>, transform_indices = @transform_2, window_bounds = array<i64: 4, 1>}, {pipeline_mode = #tpu.pipeline_mode<synchronous>, transform_indices = @transform_3, window_bounds = array<i64: 9, 4, 4>}, {pipeline_mode = #tpu.pipeline_mode<synchronous>, transform_indices = @transform_4, window_bounds = array<i64: 4, 1>}, {pipeline_mode = #tpu.pipeline_mode<synchronous>, transform_indices = @transform_5, window_bounds = array<i64: 4, 33, 32>}, {pipeline_mode = #tpu.pipeline_mode<synchronous>, transform_indices = @transform_6, window_bounds = array<i64: 1, 32>}, {pipeline_mode = #tpu.pipeline_mode<synchronous>, transform_indices = @transform_7, window_bounds = array<i64: 32, 10>}, {pipeline_mode = #tpu.pipeline_mode<synchronous>, transform_indices = @transform_8, window_bounds = array<i64: 1, 10>}, {pipeline_mode = #tpu.pipeline_mode<synchronous>, transform_indices = @transform_9, window_bounds = array<i64: 2, 10>}]} {
    %c0 = arith.constant 0 : index
    %c0_0 = arith.constant 0 : index
    %0 = vector.load %arg2[%c0, %c0_0] : memref<4x9xf32, #tpu.memory_space<vmem>>, vector<4x9xf32>
    %c0_1 = arith.constant 0 : index
    %c0_2 = arith.constant 0 : index
    %1 = vector.load %arg3[%c0_1, %c0_2] : memref<4x1xf32, #tpu.memory_space<vmem>>, vector<4x1xf32>
    %c0_3 = arith.constant 0 : index
    %c0_4 = arith.constant 0 : index
    %c0_5 = arith.constant 0 : index
    %2 = vector.load %arg1[%c0_3, %c0_4, %c0_5] : memref<4x9x98xf32, #tpu.memory_space<vmem>>, vector<1x9x98xf32>
    %3 = vector.shape_cast %2 : vector<1x9x98xf32> to vector<9x98xf32>
    %cst = arith.constant dense<0.000000e+00> : vector<4x98xf32>
    %4 = tpu.matmul %0, %3, %cst {dimension_numbers = #tpu.dot_dimension_numbers<[1], [0], [0], [1], [0, 0, 1, 1], [], []>} : vector<4x9xf32>, vector<9x98xf32>, vector<4x98xf32> -> vector<4x98xf32>
    %5 = vector.broadcast %1 : vector<4x1xf32> to vector<4x98xf32>
    %6 = arith.addf %4, %5 : vector<4x98xf32>
    %cst_6 = arith.constant 0.000000e+00 : f32
    %7 = vector.broadcast %cst_6 : f32 to vector<4x98xf32>
    %8 = arith.maximumf %6, %7 : vector<4x98xf32>
    %c1 = arith.constant 1 : index
    %c0_7 = arith.constant 0 : index
    %c0_8 = arith.constant 0 : index
    %9 = vector.load %arg1[%c1, %c0_7, %c0_8] : memref<4x9x98xf32, #tpu.memory_space<vmem>>, vector<1x9x98xf32>
    %10 = vector.shape_cast %9 : vector<1x9x98xf32> to vector<9x98xf32>
    %cst_9 = arith.constant dense<0.000000e+00> : vector<4x98xf32>
    %11 = tpu.matmul %0, %10, %cst_9 {dimension_numbers = #tpu.dot_dimension_numbers<[1], [0], [0], [1], [0, 0, 1, 1], [], []>} : vector<4x9xf32>, vector<9x98xf32>, vector<4x98xf32> -> vector<4x98xf32>
    %12 = vector.broadcast %1 : vector<4x1xf32> to vector<4x98xf32>
    %13 = arith.addf %11, %12 : vector<4x98xf32>
    %cst_10 = arith.constant 0.000000e+00 : f32
    %14 = vector.broadcast %cst_10 : f32 to vector<4x98xf32>
    %15 = arith.maximumf %13, %14 : vector<4x98xf32>
    %16 = arith.maximumf %8, %15 : vector<4x98xf32>
    %c2 = arith.constant 2 : index
    %c0_11 = arith.constant 0 : index
    %c0_12 = arith.constant 0 : index
    %17 = vector.load %arg1[%c2, %c0_11, %c0_12] : memref<4x9x98xf32, #tpu.memory_space<vmem>>, vector<1x9x98xf32>
    %18 = vector.shape_cast %17 : vector<1x9x98xf32> to vector<9x98xf32>
    %cst_13 = arith.constant dense<0.000000e+00> : vector<4x98xf32>
    %19 = tpu.matmul %0, %18, %cst_13 {dimension_numbers = #tpu.dot_dimension_numbers<[1], [0], [0], [1], [0, 0, 1, 1], [], []>} : vector<4x9xf32>, vector<9x98xf32>, vector<4x98xf32> -> vector<4x98xf32>
    %20 = vector.broadcast %1 : vector<4x1xf32> to vector<4x98xf32>
    %21 = arith.addf %19, %20 : vector<4x98xf32>
    %cst_14 = arith.constant 0.000000e+00 : f32
    %22 = vector.broadcast %cst_14 : f32 to vector<4x98xf32>
    %23 = arith.maximumf %21, %22 : vector<4x98xf32>
    %24 = arith.maximumf %16, %23 : vector<4x98xf32>
    %c3 = arith.constant 3 : index
    %c0_15 = arith.constant 0 : index
    %c0_16 = arith.constant 0 : index
    %25 = vector.load %arg1[%c3, %c0_15, %c0_16] : memref<4x9x98xf32, #tpu.memory_space<vmem>>, vector<1x9x98xf32>
    %26 = vector.shape_cast %25 : vector<1x9x98xf32> to vector<9x98xf32>
    %cst_17 = arith.constant dense<0.000000e+00> : vector<4x98xf32>
    %27 = tpu.matmul %0, %26, %cst_17 {dimension_numbers = #tpu.dot_dimension_numbers<[1], [0], [0], [1], [0, 0, 1, 1], [], []>} : vector<4x9xf32>, vector<9x98xf32>, vector<4x98xf32> -> vector<4x98xf32>
    %28 = vector.broadcast %1 : vector<4x1xf32> to vector<4x98xf32>
    %29 = arith.addf %27, %28 : vector<4x98xf32>
    %cst_18 = arith.constant 0.000000e+00 : f32
    %30 = vector.broadcast %cst_18 : f32 to vector<4x98xf32>
    %31 = arith.maximumf %29, %30 : vector<4x98xf32>
    %32 = arith.maximumf %24, %31 : vector<4x98xf32>
    %c0_19 = arith.constant 0 : index
    %c0_20 = arith.constant 0 : index
    %c0_21 = arith.constant 0 : index
    %33 = vector.load %arg4[%c0_19, %c0_20, %c0_21] : memref<9x4x4xf32, #tpu.memory_space<vmem>>, vector<1x4x4xf32>
    %34 = vector.shape_cast %33 : vector<1x4x4xf32> to vector<4x4xf32>
    %35 = vector.extract_strided_slice %32 {offsets = [0, 0], sizes = [4, 82], strides = [1, 1]} : vector<4x98xf32> to vector<4x82xf32>
    %cst_22 = arith.constant dense<0.000000e+00> : vector<4x82xf32>
    %36 = tpu.matmul %34, %35, %cst_22 {dimension_numbers = #tpu.dot_dimension_numbers<[1], [0], [0], [1], [0, 0, 1, 1], [], []>} : vector<4x4xf32>, vector<4x82xf32>, vector<4x82xf32> -> vector<4x82xf32>
    %c1_23 = arith.constant 1 : index
    %c0_24 = arith.constant 0 : index
    %c0_25 = arith.constant 0 : index
    %37 = vector.load %arg4[%c1_23, %c0_24, %c0_25] : memref<9x4x4xf32, #tpu.memory_space<vmem>>, vector<1x4x4xf32>
    %38 = vector.shape_cast %37 : vector<1x4x4xf32> to vector<4x4xf32>
    %39 = vector.extract_strided_slice %32 {offsets = [0, 1], sizes = [4, 82], strides = [1, 1]} : vector<4x98xf32> to vector<4x82xf32>
    %cst_26 = arith.constant dense<0.000000e+00> : vector<4x82xf32>
    %40 = tpu.matmul %38, %39, %cst_26 {dimension_numbers = #tpu.dot_dimension_numbers<[1], [0], [0], [1], [0, 0, 1, 1], [], []>} : vector<4x4xf32>, vector<4x82xf32>, vector<4x82xf32> -> vector<4x82xf32>
    %41 = arith.addf %36, %40 : vector<4x82xf32>
    %c2_27 = arith.constant 2 : index
    %c0_28 = arith.constant 0 : index
    %c0_29 = arith.constant 0 : index
    %42 = vector.load %arg4[%c2_27, %c0_28, %c0_29] : memref<9x4x4xf32, #tpu.memory_space<vmem>>, vector<1x4x4xf32>
    %43 = vector.shape_cast %42 : vector<1x4x4xf32> to vector<4x4xf32>
    %44 = vector.extract_strided_slice %32 {offsets = [0, 2], sizes = [4, 82], strides = [1, 1]} : vector<4x98xf32> to vector<4x82xf32>
    %cst_30 = arith.constant dense<0.000000e+00> : vector<4x82xf32>
    %45 = tpu.matmul %43, %44, %cst_30 {dimension_numbers = #tpu.dot_dimension_numbers<[1], [0], [0], [1], [0, 0, 1, 1], [], []>} : vector<4x4xf32>, vector<4x82xf32>, vector<4x82xf32> -> vector<4x82xf32>
    %46 = arith.addf %41, %45 : vector<4x82xf32>
    %c3_31 = arith.constant 3 : index
    %c0_32 = arith.constant 0 : index
    %c0_33 = arith.constant 0 : index
    %47 = vector.load %arg4[%c3_31, %c0_32, %c0_33] : memref<9x4x4xf32, #tpu.memory_space<vmem>>, vector<1x4x4xf32>
    %48 = vector.shape_cast %47 : vector<1x4x4xf32> to vector<4x4xf32>
    %49 = vector.extract_strided_slice %32 {offsets = [0, 7], sizes = [4, 82], strides = [1, 1]} : vector<4x98xf32> to vector<4x82xf32>
    %cst_34 = arith.constant dense<0.000000e+00> : vector<4x82xf32>
    %50 = tpu.matmul %48, %49, %cst_34 {dimension_numbers = #tpu.dot_dimension_numbers<[1], [0], [0], [1], [0, 0, 1, 1], [], []>} : vector<4x4xf32>, vector<4x82xf32>, vector<4x82xf32> -> vector<4x82xf32>
    %51 = arith.addf %46, %50 : vector<4x82xf32>
    %c4 = arith.constant 4 : index
    %c0_35 = arith.constant 0 : index
    %c0_36 = arith.constant 0 : index
    %52 = vector.load %arg4[%c4, %c0_35, %c0_36] : memref<9x4x4xf32, #tpu.memory_space<vmem>>, vector<1x4x4xf32>
    %53 = vector.shape_cast %52 : vector<1x4x4xf32> to vector<4x4xf32>
    %54 = vector.extract_strided_slice %32 {offsets = [0, 8], sizes = [4, 82], strides = [1, 1]} : vector<4x98xf32> to vector<4x82xf32>
    %cst_37 = arith.constant dense<0.000000e+00> : vector<4x82xf32>
    %55 = tpu.matmul %53, %54, %cst_37 {dimension_numbers = #tpu.dot_dimension_numbers<[1], [0], [0], [1], [0, 0, 1, 1], [], []>} : vector<4x4xf32>, vector<4x82xf32>, vector<4x82xf32> -> vector<4x82xf32>
    %56 = arith.addf %51, %55 : vector<4x82xf32>
    %c5 = arith.constant 5 : index
    %c0_38 = arith.constant 0 : index
    %c0_39 = arith.constant 0 : index
    %57 = vector.load %arg4[%c5, %c0_38, %c0_39] : memref<9x4x4xf32, #tpu.memory_space<vmem>>, vector<1x4x4xf32>
    %58 = vector.shape_cast %57 : vector<1x4x4xf32> to vector<4x4xf32>
    %59 = vector.extract_strided_slice %32 {offsets = [0, 9], sizes = [4, 82], strides = [1, 1]} : vector<4x98xf32> to vector<4x82xf32>
    %cst_40 = arith.constant dense<0.000000e+00> : vector<4x82xf32>
    %60 = tpu.matmul %58, %59, %cst_40 {dimension_numbers = #tpu.dot_dimension_numbers<[1], [0], [0], [1], [0, 0, 1, 1], [], []>} : vector<4x4xf32>, vector<4x82xf32>, vector<4x82xf32> -> vector<4x82xf32>
    %61 = arith.addf %56, %60 : vector<4x82xf32>
    %c6 = arith.constant 6 : index
    %c0_41 = arith.constant 0 : index
    %c0_42 = arith.constant 0 : index
    %62 = vector.load %arg4[%c6, %c0_41, %c0_42] : memref<9x4x4xf32, #tpu.memory_space<vmem>>, vector<1x4x4xf32>
    %63 = vector.shape_cast %62 : vector<1x4x4xf32> to vector<4x4xf32>
    %64 = vector.extract_strided_slice %32 {offsets = [0, 14], sizes = [4, 82], strides = [1, 1]} : vector<4x98xf32> to vector<4x82xf32>
    %cst_43 = arith.constant dense<0.000000e+00> : vector<4x82xf32>
    %65 = tpu.matmul %63, %64, %cst_43 {dimension_numbers = #tpu.dot_dimension_numbers<[1], [0], [0], [1], [0, 0, 1, 1], [], []>} : vector<4x4xf32>, vector<4x82xf32>, vector<4x82xf32> -> vector<4x82xf32>
    %66 = arith.addf %61, %65 : vector<4x82xf32>
    %c7 = arith.constant 7 : index
    %c0_44 = arith.constant 0 : index
    %c0_45 = arith.constant 0 : index
    %67 = vector.load %arg4[%c7, %c0_44, %c0_45] : memref<9x4x4xf32, #tpu.memory_space<vmem>>, vector<1x4x4xf32>
    %68 = vector.shape_cast %67 : vector<1x4x4xf32> to vector<4x4xf32>
    %69 = vector.extract_strided_slice %32 {offsets = [0, 15], sizes = [4, 82], strides = [1, 1]} : vector<4x98xf32> to vector<4x82xf32>
    %cst_46 = arith.constant dense<0.000000e+00> : vector<4x82xf32>
    %70 = tpu.matmul %68, %69, %cst_46 {dimension_numbers = #tpu.dot_dimension_numbers<[1], [0], [0], [1], [0, 0, 1, 1], [], []>} : vector<4x4xf32>, vector<4x82xf32>, vector<4x82xf32> -> vector<4x82xf32>
    %71 = arith.addf %66, %70 : vector<4x82xf32>
    %c8 = arith.constant 8 : index
    %c0_47 = arith.constant 0 : index
    %c0_48 = arith.constant 0 : index
    %72 = vector.load %arg4[%c8, %c0_47, %c0_48] : memref<9x4x4xf32, #tpu.memory_space<vmem>>, vector<1x4x4xf32>
    %73 = vector.shape_cast %72 : vector<1x4x4xf32> to vector<4x4xf32>
    %74 = vector.extract_strided_slice %32 {offsets = [0, 16], sizes = [4, 82], strides = [1, 1]} : vector<4x98xf32> to vector<4x82xf32>
    %cst_49 = arith.constant dense<0.000000e+00> : vector<4x82xf32>
    %75 = tpu.matmul %73, %74, %cst_49 {dimension_numbers = #tpu.dot_dimension_numbers<[1], [0], [0], [1], [0, 0, 1, 1], [], []>} : vector<4x4xf32>, vector<4x82xf32>, vector<4x82xf32> -> vector<4x82xf32>
    %76 = arith.addf %71, %75 : vector<4x82xf32>
    %c0_50 = arith.constant 0 : index
    %c0_51 = arith.constant 0 : index
    %77 = vector.load %arg5[%c0_50, %c0_51] : memref<4x1xf32, #tpu.memory_space<vmem>>, vector<4x1xf32>
    %78 = vector.broadcast %77 : vector<4x1xf32> to vector<4x82xf32>
    %79 = arith.addf %76, %78 : vector<4x82xf32>
    %cst_52 = arith.constant 0.000000e+00 : f32
    %80 = vector.broadcast %cst_52 : f32 to vector<4x82xf32>
    %81 = arith.maximumf %79, %80 : vector<4x82xf32>
    %c0_53 = arith.constant 0 : index
    %c0_54 = arith.constant 0 : index
    %82 = vector.load %arg7[%c0_53, %c0_54] : memref<1x32xf32, #tpu.memory_space<vmem>>, vector<1x32xf32>
    %c0_55 = arith.constant 0 : index
    %c0_56 = arith.constant 0 : index
    %83 = vector.load %arg8[%c0_55, %c0_56] : memref<32x10xf32, #tpu.memory_space<vmem>>, vector<32x10xf32>
    %c0_57 = arith.constant 0 : index
    %c0_58 = arith.constant 0 : index
    %84 = vector.load %arg9[%c0_57, %c0_58] : memref<1x10xf32, #tpu.memory_space<vmem>>, vector<1x10xf32>
    %85 = vector.extract_strided_slice %81 {offsets = [0, 0], sizes = [1, 33], strides = [1, 1]} : vector<4x82xf32> to vector<1x33xf32>
    %c0_59 = arith.constant 0 : index
    %c0_60 = arith.constant 0 : index
    %c0_61 = arith.constant 0 : index
    %86 = vector.load %arg6[%c0_59, %c0_60, %c0_61] : memref<4x33x32xf32, #tpu.memory_space<vmem>>, vector<1x33x32xf32>
    %87 = vector.shape_cast %86 : vector<1x33x32xf32> to vector<33x32xf32>
    %cst_62 = arith.constant dense<0.000000e+00> : vector<1x32xf32>
    %88 = tpu.matmul %85, %87, %cst_62 {dimension_numbers = #tpu.dot_dimension_numbers<[1], [0], [0], [1], [0, 0, 1, 1], [], []>} : vector<1x33xf32>, vector<33x32xf32>, vector<1x32xf32> -> vector<1x32xf32>
    %89 = arith.addf %82, %88 : vector<1x32xf32>
    %90 = vector.extract_strided_slice %81 {offsets = [1, 0], sizes = [1, 33], strides = [1, 1]} : vector<4x82xf32> to vector<1x33xf32>
    %c1_63 = arith.constant 1 : index
    %c0_64 = arith.constant 0 : index
    %c0_65 = arith.constant 0 : index
    %91 = vector.load %arg6[%c1_63, %c0_64, %c0_65] : memref<4x33x32xf32, #tpu.memory_space<vmem>>, vector<1x33x32xf32>
    %92 = vector.shape_cast %91 : vector<1x33x32xf32> to vector<33x32xf32>
    %cst_66 = arith.constant dense<0.000000e+00> : vector<1x32xf32>
    %93 = tpu.matmul %90, %92, %cst_66 {dimension_numbers = #tpu.dot_dimension_numbers<[1], [0], [0], [1], [0, 0, 1, 1], [], []>} : vector<1x33xf32>, vector<33x32xf32>, vector<1x32xf32> -> vector<1x32xf32>
    %94 = arith.addf %89, %93 : vector<1x32xf32>
    %95 = vector.extract_strided_slice %81 {offsets = [2, 0], sizes = [1, 33], strides = [1, 1]} : vector<4x82xf32> to vector<1x33xf32>
    %c2_67 = arith.constant 2 : index
    %c0_68 = arith.constant 0 : index
    %c0_69 = arith.constant 0 : index
    %96 = vector.load %arg6[%c2_67, %c0_68, %c0_69] : memref<4x33x32xf32, #tpu.memory_space<vmem>>, vector<1x33x32xf32>
    %97 = vector.shape_cast %96 : vector<1x33x32xf32> to vector<33x32xf32>
    %cst_70 = arith.constant dense<0.000000e+00> : vector<1x32xf32>
    %98 = tpu.matmul %95, %97, %cst_70 {dimension_numbers = #tpu.dot_dimension_numbers<[1], [0], [0], [1], [0, 0, 1, 1], [], []>} : vector<1x33xf32>, vector<33x32xf32>, vector<1x32xf32> -> vector<1x32xf32>
    %99 = arith.addf %94, %98 : vector<1x32xf32>
    %100 = vector.extract_strided_slice %81 {offsets = [3, 0], sizes = [1, 33], strides = [1, 1]} : vector<4x82xf32> to vector<1x33xf32>
    %c3_71 = arith.constant 3 : index
    %c0_72 = arith.constant 0 : index
    %c0_73 = arith.constant 0 : index
    %101 = vector.load %arg6[%c3_71, %c0_72, %c0_73] : memref<4x33x32xf32, #tpu.memory_space<vmem>>, vector<1x33x32xf32>
    %102 = vector.shape_cast %101 : vector<1x33x32xf32> to vector<33x32xf32>
    %cst_74 = arith.constant dense<0.000000e+00> : vector<1x32xf32>
    %103 = tpu.matmul %100, %102, %cst_74 {dimension_numbers = #tpu.dot_dimension_numbers<[1], [0], [0], [1], [0, 0, 1, 1], [], []>} : vector<1x33xf32>, vector<33x32xf32>, vector<1x32xf32> -> vector<1x32xf32>
    %104 = arith.addf %99, %103 : vector<1x32xf32>
    %cst_75 = arith.constant 0.000000e+00 : f32
    %105 = vector.broadcast %cst_75 : f32 to vector<1x32xf32>
    %106 = arith.maximumf %104, %105 : vector<1x32xf32>
    %cst_76 = arith.constant dense<0.000000e+00> : vector<1x10xf32>
    %107 = tpu.matmul %106, %83, %cst_76 {dimension_numbers = #tpu.dot_dimension_numbers<[1], [0], [0], [1], [0, 0, 1, 1], [], []>} : vector<1x32xf32>, vector<32x10xf32>, vector<1x10xf32> -> vector<1x10xf32>
    %108 = arith.addf %107, %84 : vector<1x10xf32>
    %c0_77 = arith.constant 0 : index
    %c0_78 = arith.constant 0 : index
    %109 = vector.load %arg10[%c0_77, %c0_78] : memref<2x10xf32, #tpu.memory_space<vmem>>, vector<1x10xf32>
    tpu.vector_store %arg10[%c0_77, %c0_78], %108 {strides = array<i32>} : memref<2x10xf32, #tpu.memory_space<vmem>>, vector<1x10xf32>,
    %110 = vector.extract_strided_slice %81 {offsets = [0, 49], sizes = [1, 33], strides = [1, 1]} : vector<4x82xf32> to vector<1x33xf32>
    %c0_79 = arith.constant 0 : index
    %c0_80 = arith.constant 0 : index
    %c0_81 = arith.constant 0 : index
    %111 = vector.load %arg6[%c0_79, %c0_80, %c0_81] : memref<4x33x32xf32, #tpu.memory_space<vmem>>, vector<1x33x32xf32>
    %112 = vector.shape_cast %111 : vector<1x33x32xf32> to vector<33x32xf32>
    %cst_82 = arith.constant dense<0.000000e+00> : vector<1x32xf32>
    %113 = tpu.matmul %110, %112, %cst_82 {dimension_numbers = #tpu.dot_dimension_numbers<[1], [0], [0], [1], [0, 0, 1, 1], [], []>} : vector<1x33xf32>, vector<33x32xf32>, vector<1x32xf32> -> vector<1x32xf32>
    %114 = arith.addf %82, %113 : vector<1x32xf32>
    %115 = vector.extract_strided_slice %81 {offsets = [1, 49], sizes = [1, 33], strides = [1, 1]} : vector<4x82xf32> to vector<1x33xf32>
    %c1_83 = arith.constant 1 : index
    %c0_84 = arith.constant 0 : index
    %c0_85 = arith.constant 0 : index
    %116 = vector.load %arg6[%c1_83, %c0_84, %c0_85] : memref<4x33x32xf32, #tpu.memory_space<vmem>>, vector<1x33x32xf32>
    %117 = vector.shape_cast %116 : vector<1x33x32xf32> to vector<33x32xf32>
    %cst_86 = arith.constant dense<0.000000e+00> : vector<1x32xf32>
    %118 = tpu.matmul %115, %117, %cst_86 {dimension_numbers = #tpu.dot_dimension_numbers<[1], [0], [0], [1], [0, 0, 1, 1], [], []>} : vector<1x33xf32>, vector<33x32xf32>, vector<1x32xf32> -> vector<1x32xf32>
    %119 = arith.addf %114, %118 : vector<1x32xf32>
    %120 = vector.extract_strided_slice %81 {offsets = [2, 49], sizes = [1, 33], strides = [1, 1]} : vector<4x82xf32> to vector<1x33xf32>
    %c2_87 = arith.constant 2 : index
    %c0_88 = arith.constant 0 : index
    %c0_89 = arith.constant 0 : index
    %121 = vector.load %arg6[%c2_87, %c0_88, %c0_89] : memref<4x33x32xf32, #tpu.memory_space<vmem>>, vector<1x33x32xf32>
    %122 = vector.shape_cast %121 : vector<1x33x32xf32> to vector<33x32xf32>
    %cst_90 = arith.constant dense<0.000000e+00> : vector<1x32xf32>
    %123 = tpu.matmul %120, %122, %cst_90 {dimension_numbers = #tpu.dot_dimension_numbers<[1], [0], [0], [1], [0, 0, 1, 1], [], []>} : vector<1x33xf32>, vector<33x32xf32>, vector<1x32xf32> -> vector<1x32xf32>
    %124 = arith.addf %119, %123 : vector<1x32xf32>
    %125 = vector.extract_strided_slice %81 {offsets = [3, 49], sizes = [1, 33], strides = [1, 1]} : vector<4x82xf32> to vector<1x33xf32>
    %c3_91 = arith.constant 3 : index
    %c0_92 = arith.constant 0 : index
    %c0_93 = arith.constant 0 : index
    %126 = vector.load %arg6[%c3_91, %c0_92, %c0_93] : memref<4x33x32xf32, #tpu.memory_space<vmem>>, vector<1x33x32xf32>
    %127 = vector.shape_cast %126 : vector<1x33x32xf32> to vector<33x32xf32>
    %cst_94 = arith.constant dense<0.000000e+00> : vector<1x32xf32>
    %128 = tpu.matmul %125, %127, %cst_94 {dimension_numbers = #tpu.dot_dimension_numbers<[1], [0], [0], [1], [0, 0, 1, 1], [], []>} : vector<1x33xf32>, vector<33x32xf32>, vector<1x32xf32> -> vector<1x32xf32>
    %129 = arith.addf %124, %128 : vector<1x32xf32>
    %cst_95 = arith.constant 0.000000e+00 : f32
    %130 = vector.broadcast %cst_95 : f32 to vector<1x32xf32>
    %131 = arith.maximumf %129, %130 : vector<1x32xf32>
    %cst_96 = arith.constant dense<0.000000e+00> : vector<1x10xf32>
    %132 = tpu.matmul %131, %83, %cst_96 {dimension_numbers = #tpu.dot_dimension_numbers<[1], [0], [0], [1], [0, 0, 1, 1], [], []>} : vector<1x32xf32>, vector<32x10xf32>, vector<1x10xf32> -> vector<1x10xf32>
    %133 = arith.addf %132, %84 : vector<1x10xf32>
    %c1_97 = arith.constant 1 : index
    %c0_98 = arith.constant 0 : index
    %134 = vector.load %arg10[%c1_97, %c0_98] : memref<2x10xf32, #tpu.memory_space<vmem>>, vector<1x10xf32>
    tpu.vector_store %arg10[%c1_97, %c0_98], %133 {strides = array<i32>} : memref<2x10xf32, #tpu.memory_space<vmem>>, vector<1x10xf32>,
    return
  }
  func.func @transform_0(%arg0: i32) -> (i32, i32, i32) {
    %c0_i32 = arith.constant 0 : i32
    %c0_i32_0 = arith.constant 0 : i32
    %c0_i32_1 = arith.constant 0 : i32
    %c0_i32_2 = arith.constant 0 : i32
    return %c0_i32, %c0_i32_0, %c0_i32_1 : i32, i32, i32
  }
  func.func @transform_1(%arg0: i32) -> (i32, i32) {
    %c0_i32 = arith.constant 0 : i32
    %c0_i32_0 = arith.constant 0 : i32
    %c0_i32_1 = arith.constant 0 : i32
    return %c0_i32, %c0_i32_0 : i32, i32
  }
  func.func @transform_2(%arg0: i32) -> (i32, i32) {
    %c0_i32 = arith.constant 0 : i32
    %c0_i32_0 = arith.constant 0 : i32
    %c0_i32_1 = arith.constant 0 : i32
    return %c0_i32, %c0_i32_0 : i32, i32
  }
  func.func @transform_3(%arg0: i32) -> (i32, i32, i32) {
    %c0_i32 = arith.constant 0 : i32
    %c0_i32_0 = arith.constant 0 : i32
    %c0_i32_1 = arith.constant 0 : i32
    %c0_i32_2 = arith.constant 0 : i32
    return %c0_i32, %c0_i32_0, %c0_i32_1 : i32, i32, i32
  }
  func.func @transform_4(%arg0: i32) -> (i32, i32) {
    %c0_i32 = arith.constant 0 : i32
    %c0_i32_0 = arith.constant 0 : i32
    %c0_i32_1 = arith.constant 0 : i32
    return %c0_i32, %c0_i32_0 : i32, i32
  }
  func.func @transform_5(%arg0: i32) -> (i32, i32, i32) {
    %c0_i32 = arith.constant 0 : i32
    %c0_i32_0 = arith.constant 0 : i32
    %c0_i32_1 = arith.constant 0 : i32
    %c0_i32_2 = arith.constant 0 : i32
    return %c0_i32, %c0_i32_0, %c0_i32_1 : i32, i32, i32
  }
  func.func @transform_6(%arg0: i32) -> (i32, i32) {
    %c0_i32 = arith.constant 0 : i32
    %c0_i32_0 = arith.constant 0 : i32
    %c0_i32_1 = arith.constant 0 : i32
    return %c0_i32, %c0_i32_0 : i32, i32
  }
  func.func @transform_7(%arg0: i32) -> (i32, i32) {
    %c0_i32 = arith.constant 0 : i32
    %c0_i32_0 = arith.constant 0 : i32
    %c0_i32_1 = arith.constant 0 : i32
    return %c0_i32, %c0_i32_0 : i32, i32
  }
  func.func @transform_8(%arg0: i32) -> (i32, i32) {
    %c0_i32 = arith.constant 0 : i32
    %c0_i32_0 = arith.constant 0 : i32
    %c0_i32_1 = arith.constant 0 : i32
    return %c0_i32, %c0_i32_0 : i32, i32
  }
  func.func @transform_9(%arg0: i32) -> (i32, i32) {
    %c0_i32 = arith.constant 0 : i32
    %c0_i32_0 = arith.constant 0 : i32
    %c0_i32_1 = arith.constant 0 : i32
    return %c0_i32, %c0_i32_0 : i32, i32
  }
}

</mosaic_0001>

<bundles_post_ra>
// kernel: lenet5_forward.1
= control target key start
LH: loop header
LB: loop body
LE: loop exit
PB: predicated region body
PF: predicated region fallthrough
CT: control target
= control target key end

     0   :  { %vm46_vm0 = vcmask 1040384   ;;  %v2423_v2 = vmov 0.0|0.0   ;;  %vm2424_vm1 = vmmov 1   ;;  %vm2425_vm3 = vmmov 0   ;;  %s2810_s0 = inlined_call_operand.vmem [shape: f32[4,9,98], index: 0, kind: input, shape index: {}]   ;;  %s2811_s1 = inlined_call_operand.vmem [shape: f32[4,9], index: 1, kind: input, shape index: {}]   ;;  %s2812_s2 = inlined_call_operand.vmem [shape: f32[4,1], index: 2, kind: input, shape index: {}]   ;;  %s2813_s3 = inlined_call_operand.vmem [shape: f32[9,4,4], index: 3, kind: input, shape index: {}]   ;;  %s2814_s4 = inlined_call_operand.vmem [shape: f32[4,1], index: 4, kind: input, shape index: {}]   ;;  %s2815_s5 = inlined_call_operand.vmem [shape: f32[4,33,32], index: 5, kind: input, shape index: {}]   ;;  %s2816_s6 = inlined_call_operand.vmem [shape: f32[1,32], index: 6, kind: input, shape index: {}]   ;;  %s2817_s7 = inlined_call_operand.vmem [shape: f32[32,10], index: 7, kind: input, shape index: {}]   ;;  %s2818_s8 = inlined_call_operand.vmem [shape: f32[1,10], index: 8, kind: input, shape index: {}]   ;;  %s2819_s9 = inlined_call_operand.hbm [shape: f32[2,10], index: 9, kind: output, shape index: {}]  }
   0x1   :  { %v35_v0 = vld [vmem:[%s2810_s0] sm:$0xff]  ;;  %v36_v1 = vld [vmem:[%s2810_s0 + $0x8] sm:$0x1]  ;;  %2292 = vmatprep.subr.bf16.mxu0 %v2423_v2  ;;  %2296 = vmatprep.subr.bf16.mxu1 %v2423_v2  ;;  %vm2497_vm2 = vmpackc.low %vm46_vm0, %vm2424_vm1  ;;  %v2426_v8 = vmov 0.0   ;;  %vm42_vm4 = vcmask 72704   ;;  %v2427_v15 = vmov 0  }
   0x2   :  { %v2293_v3 = vpack.c.bf16 %v36_v1, %v35_v0  ;;  %v1919_v5 = vld [vmem:[%s2810_s0 + $0x10] sm:$0xff]  ;;  %v1920_v6 = vld [vmem:[%s2810_s0 + $0x18] sm:$0x1]  ;;  %2097 = vmatprep.mubr.msk.f32.mxu0 %vm2425_vm3, %v2426_v8  ;;  %2104 = vmatprep.mubr.msk.f32.mxu1 %vm2425_vm3, %v2426_v8  ;;  %v33_v9 = vld [vmem:[%s2811_s1] sm:$0xf] }
   0x3   :  { %v2297_v7 = vpack.c.bf16 %v1920_v6, %v1919_v5  ;;  %v1923_v10 = vld [vmem:[%s2810_s0 + $0x20] sm:$0xff]  ;;  %v1924_v11 = vld [vmem:[%s2810_s0 + $0x28] sm:$0x1]  ;;  %v1927_v13 = vld [vmem:[%s2810_s0 + $0x30] sm:$0xff]  ;;  %2397 = vset.pattern.permute.xlu0 %v2427_v15 }
   0x4   :  { %2295 = vmatpush3.bf16.msk.msra.mxu0 %vm2497_vm2, %v2293_v3  ;;  %v2301_v12 = vpack.c.bf16 %v1924_v11, %v1923_v10  ;;  %v1928_v14 = vld [vmem:[%s2810_s0 + $0x38] sm:$0x1]  ;;  %v34_v16 = vld [vmem:[%s2812_s2] sm:$0xf] }
   0x5   :  { %2299 = vmatpush3.bf16.msk.msra.mxu1 %vm2497_vm2, %v2297_v7  ;;  %2300 = vmatprep.subr.bf16.mxu0 %v2423_v2  ;;  %v2305_v17 = vpack.c.bf16 %v1928_v14, %v1927_v13 }
   0x6   :  { %14 = vsyncpa [#allocation3], 0  ;;  %2304 = vmatprep.subr.bf16.mxu1 %v2423_v2  ;;  %39 = vperm.xlu0 %2397, %v34_v16   ;;  %vm365_vm5 = vcmask 1043456   ;;  %vm361_vm6 = vcmask 31744   ;;  %v355_v38 = vld [vmem:[%s2813_s3] sm:$0xf] }
   0x7   :  { %2098 = vmatmul.mubr.msk.f32.vlgmr.msra.gmra.mrb[0].mxu0 %vm42_vm4, %v33_v9  ;;  %2398 = vset.pattern.permute.xlu1 %v2427_v15  ;;  %s2428_s28 = smov 126   ;;  %s2429_s29 = smov 127   ;;  %v1073_v39 = vld [vmem:[%s2814_s4] sm:$0xf]  ;;  %v1931_v40 = vld [vmem:[%s2813_s3 + $0x4] sm:$0xf] }
   0x8   :  { %2105 = vmatmul.mubr.msk.f32.vlgmr.msra.gmra.mrb[0].mxu1 %vm42_vm4, %v33_v9  ;;  %2303 = vmatpush3.bf16.msk.msra.mxu0 %vm2497_vm2, %v2301_v12  ;;  %s2430_s30 = smov 121   ;;  %s2431_s10 = smov 120   ;;  %v1936_v43 = vld [vmem:[%s2813_s3 + $0x8] sm:$0xf]  ;;  %v1939_v44 = vld [vmem:[%s2813_s3 + $0xc] sm:$0xf] }
   0x9   :  { %2307 = vmatpush3.bf16.msk.msra.mxu1 %vm2497_vm2, %v2305_v17  ;;  %2111 = vmatprep.mubr.msk.f32.mxu0 %vm2425_vm3, %v2426_v8  ;;  %s2432_s11 = smov 119   ;;  %s2433_s12 = smov 114   ;;  %v1942_v47 = vld [vmem:[%s2813_s3 + $0x10] sm:$0xf]  ;;  %v1945_v48 = vld [vmem:[%s2813_s3 + $0x14] sm:$0xf] }
   0xa   :  { %2118 = vmatprep.mubr.msk.f32.mxu1 %vm2425_vm3, %v2426_v8  ;;  %2126 = vmatprep.subr.mxu1 %v2426_v8  ;;  %s2434_s13 = smov 113   ;;  %s2435_s14 = smov 112   ;;  %v1948_v51 = vld [vmem:[%s2813_s3 + $0x18] sm:$0xf]  ;;  %v1951_v52 = vld [vmem:[%s2813_s3 + $0x1c] sm:$0xf] }
   0xb   :  { %2112 = vmatmul.mubr.msk.f32.vlgmr.msra.gmra.mrb[2].mxu0 %vm42_vm4, %v33_v9  ;;  %2121 = vmatprep.subr.mxu0 %v2426_v8  ;;  %v1954_v55 = vld [vmem:[%s2813_s3 + $0x20] sm:$0xf]  ;;  %v1088_v57 = vld [vmem:[%s2815_s5 + $0x8] sm:$0xff]  ;;  %v1089_v61 = vld [vmem:[%s2815_s5 + $0x10] sm:$0xff]  ;;  %vm1092_vm7 = vcmask 269312   ;;  %s2436_s27 = smov 79  }
   0xc   :  { %2119 = vmatmul.mubr.msk.f32.vlgmr.msra.gmra.mrb[2].mxu1 %vm42_vm4, %v33_v9  ;;  %2123 = vmatprep.mubr.msk.f32.mxu0 %vm2425_vm3, %v2426_v8  ;;  %v1087_v56 = vld [vmem:[%s2815_s5] sm:$0xff]  ;;  %v1090_v62 = vld [vmem:[%s2815_s5 + $0x18] sm:$0xff]  ;;  %vm1420_vm8 = vcmask 261120   ;;  %vm1494_vm9 = vcmask 73728  }
   0xd   :  { %2128 = vmatprep.mubr.msk.f32.mxu1 %vm2425_vm3, %v2426_v8  ;;  %v2634_v58 = vpack.c.bf16 %v1088_v57, %v1087_v56  ;;  %v2644_v63 = vpack.c.bf16 %v1090_v62, %v1089_v61  ;;  %v1091_v0 = vld [vmem:[%s2815_s5 + $0x20] sm:$0x1]  ;;  %v1977_v56 = vld [vmem:[%s2815_s5 + $0x98] sm:$0x1]  ;;  %v1084_v57 = vld [vmem:[%s2817_s7 + $0x10] sm:$0xff] }
   0xe   :  { %v1081_v61 = vld [vmem:[%s2816_s6] sm:$0x1] }
  0x85   :  { %v40_v18 = vpop.permute.xlu0 %39 }
  0xda   :  { %v116_v19 = vpop.f32.mrb[0].mxu0 }
  0xdb   :  { %v117_v20 = vadd.f32 %v116_v19, %v40_v18  ;;  %v193_v21 = vpop.f32.mrb[0].mxu1  ;;  %v2099_v22 = vpop.f32.mrb[1].mxu0 }
  0xdc   :  { %v194_v23 = vadd.f32 %v193_v21, %v40_v18  ;;  %v2106_v24 = vpop.f32.mrb[1].mxu1 }
  0xdd   :  { %v120_v25 = vmax.f32 %v117_v20, 0.0  ;;  %v1082_v24 = vld [vmem:[%s2817_s7] sm:$0xff] }
  0xde   :  { %v197_v26 = vmax.f32 %v194_v23, 0.0  ;;  %v271_v27 = vpop.f32.mrb[2].mxu0 }
  0xdf   :  { %v272_v28 = vadd.f32 %v271_v27, %v40_v18  ;;  %v349_v29 = vpop.f32.mrb[2].mxu1  ;;  %v2113_v30 = vpop.f32.mrb[3].mxu0 }
  0xe0   :  { %v198_v31 = vmax.f32 %v120_v25, %v197_v26  ;;  %v350_v32 = vadd.f32 %v349_v29, %v40_v18  ;;  %v2120_v33 = vpop.f32.mrb[3].mxu1  ;;  %v1083_v25 = vld [vmem:[%s2817_s7 + $0x8] sm:$0xff] }
  0xe1   :  { %v275_v34 = vmax.f32 %v272_v28, 0.0  ;;  %v2333_v28 = vpack.c.bf16 %v1083_v25, %v1082_v24 }
  0xe2   :  { %v353_v36 = vmax.f32 %v350_v32, 0.0  ;;  %v1960_v32 = vld [vmem:[%s2815_s5 + $0x30] sm:$0xff] }
  0xe3   :  { %v276_v35 = vmax.f32 %v198_v31, %v275_v34  ;;  %v1959_v31 = vld [vmem:[%s2815_s5 + $0x28] sm:$0xff] }
  0xe4   :  { %v2666_v34 = vpack.c.bf16 %v1960_v32, %v1959_v31 }
  0xe5   :  { %v354_v37 = vmax.f32 %v276_v35, %v353_v36  ;;  %v1961_v36 = vld [vmem:[%s2815_s5 + $0x38] sm:$0xff] }
  0xe7   :  { %515 = vrot.lane.b32.xlu1 %v354_v37, %s2428_s28  ;;  %359 = vrot.lane.b32.xlu0 %v354_v37, %s2429_s29 }
  0xe8   :  { %2127 = vmatpush3.msk.msra.mxu1 %vm365_vm5, %v354_v37 }
  0xe9   :  { %2129 = vmatmul.mubr.msk.f32.vlgmr.msra.gmra.mrb[4].mxu1 %vm361_vm6, %v355_v38  ;;  %2136 = vmatprep.subr.mxu1 %v2426_v8 }
  0xea   :  { %2138 = vmatprep.mubr.msk.f32.mxu1 %vm2425_vm3, %v2426_v8 }
  0xeb   :  { %595 = vrot.lane.b32.xlu1 %v354_v37, %s2430_s30  ;;  %675 = vrot.lane.b32.xlu0 %v354_v37, %s2431_s10 }
  0xef   :  { %755 = vrot.lane.b32.xlu1 %v354_v37, %s2432_s11  ;;  %835 = vrot.lane.b32.xlu0 %v354_v37, %s2433_s12 }
  0xf3   :  { %915 = vrot.lane.b32.xlu1 %v354_v37, %s2434_s13  ;;  %995 = vrot.lane.b32.xlu0 %v354_v37, %s2435_s14  ;;  %v1962_v37 = vld [vmem:[%s2815_s5 + $0x40] sm:$0xff] }
  0xf7   :  { %1076 = vperm.xlu1 %2398, %v1073_v39   ;;  %v2676_v39 = vpack.c.bf16 %v1962_v37, %v1961_v36 }
 0x159   :  { %v516_v41 = vpop.permute.xlu1 %515  ;;  %v360_v42 = vpop.permute.xlu0 %359 }
 0x15a   :  { %2122 = vmatpush3.msk.msra.mxu0 %vm365_vm5, %v360_v42  ;;  %v1966_v42 = vld [vmem:[%s2815_s5 + $0x50] sm:$0xff] }
 0x15b   :  { %2124 = vmatmul.mubr.msk.f32.vlgmr.msra.gmra.mrb[4].mxu0 %vm361_vm6, %v1931_v40  ;;  %2131 = vmatprep.subr.mxu0 %v2426_v8 }
 0x15c   :  { %2132 = vmatpush3.msk.msra.mxu0 %vm365_vm5, %v516_v41  ;;  %2133 = vmatprep.mubr.msk.f32.mxu0 %vm2425_vm3, %v2426_v8 }
 0x15d   :  { %v596_v45 = vpop.permute.xlu1 %595  ;;  %v676_v46 = vpop.permute.xlu0 %675  ;;  %2141 = vmatprep.subr.mxu0 %v2426_v8 }
 0x15e   :  { %2137 = vmatpush3.msk.msra.mxu1 %vm365_vm5, %v596_v45 }
 0x15f   :  { %2134 = vmatmul.mubr.msk.f32.vlgmr.msra.gmra.mrb[6].mxu0 %vm361_vm6, %v1936_v43  ;;  %2139 = vmatmul.mubr.msk.f32.vlgmr.msra.gmra.mrb[6].mxu1 %vm361_vm6, %v1939_v44  ;;  %v1967_v43 = vld [vmem:[%s2815_s5 + $0x58] sm:$0xff]  ;;  %v1963_v44 = vld [vmem:[%s2815_s5 + $0x48] sm:$0x1] }
 0x160   :  { %2142 = vmatpush3.msk.msra.mxu0 %vm365_vm5, %v676_v46  ;;  %2146 = vmatprep.subr.mxu1 %v2426_v8  ;;  %v2692_v45 = vpack.c.bf16 %v1967_v43, %v1966_v42  ;;  %v1968_v46 = vld [vmem:[%s2815_s5 + $0x60] sm:$0xff] }
 0x161   :  { %v756_v49 = vpop.permute.xlu1 %755  ;;  %v836_v50 = vpop.permute.xlu0 %835  ;;  %2143 = vmatprep.mubr.msk.f32.mxu0 %vm2425_vm3, %v2426_v8  ;;  %2151 = vmatprep.subr.mxu0 %v2426_v8 }
 0x162   :  { %2147 = vmatpush3.msk.msra.mxu1 %vm365_vm5, %v756_v49  ;;  %2148 = vmatprep.mubr.msk.f32.mxu1 %vm2425_vm3, %v2426_v8  ;;  %v1973_v49 = vld [vmem:[%s2815_s5 + $0x78] sm:$0xff] }
 0x163   :  { %2144 = vmatmul.mubr.msk.f32.vlgmr.msra.gmra.mrb[8].mxu0 %vm361_vm6, %v1942_v47  ;;  %2149 = vmatmul.mubr.msk.f32.vlgmr.msra.gmra.mrb[8].mxu1 %vm361_vm6, %v1945_v48  ;;  %v1969_v47 = vld [vmem:[%s2815_s5 + $0x68] sm:$0xff] }
 0x164   :  { %2152 = vmatpush3.msk.msra.mxu0 %vm365_vm5, %v836_v50  ;;  %2156 = vmatprep.subr.mxu1 %v2426_v8  ;;  %v2324_v48 = vpack.c.bf16 %v1969_v47, %v1968_v46  ;;  %v1974_v50 = vld [vmem:[%s2815_s5 + $0x80] sm:$0xff] }
 0x165   :  { %v916_v53 = vpop.permute.xlu1 %915  ;;  %v996_v54 = vpop.permute.xlu0 %995  ;;  %2153 = vmatprep.mubr.msk.f32.mxu0 %vm2425_vm3, %v2426_v8  ;;  %2161 = vmatprep.subr.mxu0 %v2426_v8 }
 0x166   :  { %2157 = vmatpush3.msk.msra.mxu1 %vm365_vm5, %v916_v53  ;;  %2158 = vmatprep.mubr.msk.f32.mxu1 %vm2425_vm3, %v2426_v8  ;;  %v1975_v53 = vld [vmem:[%s2815_s5 + $0x88] sm:$0xff] }
 0x167   :  { %2154 = vmatmul.mubr.msk.f32.vlgmr.msra.gmra.mrb[10].mxu0 %vm361_vm6, %v1948_v51  ;;  %2159 = vmatmul.mubr.msk.f32.vlgmr.msra.gmra.mrb[10].mxu1 %vm361_vm6, %v1951_v52  ;;  %v1970_v51 = vld [vmem:[%s2815_s5 + $0x70] sm:$0x1]  ;;  %v2327_v52 = vpack.c.bf16 %v1974_v50, %v1973_v49 }
 0x168   :  { %2162 = vmatpush3.msk.msra.mxu0 %vm365_vm5, %v996_v54  ;;  %2163 = vmatprep.mubr.msk.f32.mxu0 %vm2425_vm3, %v2426_v8  ;;  %v1976_v54 = vld [vmem:[%s2815_s5 + $0x90] sm:$0xff] }
 0x169   :  { %2308 = vmatprep.subr.bf16.mxu1 %v2423_v2  ;;  %2176 = vmatprep.mubr.msk.f32.mxu1 %vm2425_vm3, %v2426_v8 }
 0x16a   :  { %2332 = vmatprep.subr.bf16.mxu0 %v2423_v2  ;;  %2310 = vmatpush3.bf16.msra.mxu1 %v2634_v58 }
 0x16b   :  { %2164 = vmatmul.mubr.msk.f32.vlgmr.msra.gmra.mrb[12].mxu0 %vm361_vm6, %v1954_v55  ;;  %2311 = vmatprep.subr.bf16.mxu1 %v2423_v2  ;;  %v2330_v55 = vpack.c.bf16 %v1976_v54, %v1975_v53 }
 0x16c   :  { %2226 = vmatprep.mubr.msk.f32.mxu0 %vm2425_vm3, %v2426_v8  ;;  %2334 = vmatpush3.bf16.msra.mxu0 %v2333_v28 }
 0x16d   :  { %2335 = vmatprep.subr.bf16.mxu0 %v2423_v2 }
 0x16e   :  { %2313 = vmatpush3.bf16.msra.mxu1 %v2644_v63 }
 0x16f   :  { %2174 = vmatprep.subr.mxu1 %v2426_v8 }
 0x172   :  { %2175 = vmatpush3.msk.msra.mxu1 %vm46_vm0, %v1091_v0 }
 0x173   :  { %2314 = vmatprep.subr.bf16.mxu1 %v2423_v2 }
 0x176   :  { %v1077_v27 = vpop.permute.xlu1 %1076 }
 0x1bc   :  { %v509_v59 = vpop.f32.mrb[4].mxu1 }
 0x1bd   :  { %v2130_v60 = vpop.f32.mrb[5].mxu1 }
 0x22e   :  { %v434_v1 = vpop.f32.mrb[4].mxu0 }
 0x22f   :  { %v2125_v3 = vpop.f32.mrb[5].mxu0  ;;  %v510_v4 = vadd.f32 %v509_v59, %v434_v1  ;;  %v1085_v59 = vld [vmem:[%s2817_s7 + $0x18] sm:$0xff] }
 0x230   :  { %v2336_v60 = vpack.c.bf16 %v1085_v59, %v1084_v57 }
 0x232   :  { %v588_v5 = vpop.f32.mrb[6].mxu0  ;;  %v668_v6 = vpop.f32.mrb[6].mxu1  ;;  %2337 = vmatpush3.bf16.msra.mxu0 %v2336_v60 }
 0x233   :  { %v592_v7 = vadd.f32 %v588_v5, %v510_v4  ;;  %v2135_v9 = vpop.f32.mrb[7].mxu0  ;;  %v2140_v10 = vpop.f32.mrb[7].mxu1  ;;  %2338 = vmatprep.subr.bf16.mxu0 %v2423_v2  ;;  %v1500_v4 = vld [vmem:[%s2815_s5 + $0x20] sm:$0x1] }
 0x234   :  { %v2001_v9 = vld [vmem:[%s2815_s5 + $0x98] sm:$0x1] }
 0x235   :  { %v672_v11 = vadd.f32 %v668_v6, %v592_v7  ;;  %v1994_v6 = vld [vmem:[%s2815_s5 + $0x70] sm:$0x1] }
 0x236   :  { %v748_v12 = vpop.f32.mrb[8].mxu0  ;;  %v828_v13 = vpop.f32.mrb[8].mxu1 }
 0x237   :  { %v752_v14 = vadd.f32 %v748_v12, %v672_v11  ;;  %v2145_v15 = vpop.f32.mrb[9].mxu0  ;;  %v2150_v16 = vpop.f32.mrb[9].mxu1  ;;  %v1086_v11 = vld [vmem:[%s2818_s8] sm:$0x1] }
 0x239   :  { %v832_v17 = vadd.f32 %v828_v13, %v752_v14 }
 0x23a   :  { %v908_v18 = vpop.f32.mrb[10].mxu0  ;;  %v988_v19 = vpop.f32.mrb[10].mxu1 }
 0x23b   :  { %v912_v20 = vadd.f32 %v908_v18, %v832_v17  ;;  %v2155_v21 = vpop.f32.mrb[11].mxu0  ;;  %v2160_v22 = vpop.f32.mrb[11].mxu1 }
 0x23d   :  { %v992_v23 = vadd.f32 %v988_v19, %v912_v20 }
 0x23e   :  { %v1068_v26 = vpop.f32.mrb[12].mxu0 }
 0x23f   :  { %v1072_v29 = vadd.f32 %v1068_v26, %v992_v23  ;;  %v2165_v30 = vpop.f32.mrb[13].mxu0 }
 0x241   :  { %v1079_v33 = vadd.f32 %v1077_v27, %v1072_v29 }
 0x243   :  { %v1080_v35 = vmax.f32 %v1079_v33, 0.0 }
 0x245   :  { %1501 = vrot.lane.b32.xlu0 %v1080_v35, %s2436_s27  ;;  %2177 = vmatmul.mubr.msk.f32.vlgmr.msra.gmra.mrb[12].mxu1 %vm1092_vm7, %v1080_v35  ;;  %v1176_v38 = vrot.slane %v1080_v35, 1  ;;  %v1259_v40 = vrot.slane %v1080_v35, 2  ;;  %v1342_v41 = vrot.slane %v1080_v35, 3 }
 0x246   :  { %2316 = vmatpush3.bf16.msra.mxu1 %v2666_v34  ;;  %2189 = vmatprep.mubr.msk.f32.mxu1 %vm2425_vm3, %v2426_v8 }
 0x247   :  { %1584 = vrot.lane.b32.xlu1 %v1176_v38, %s2436_s27  ;;  %2317 = vmatprep.subr.bf16.mxu1 %v2423_v2 }
 0x249   :  { %1667 = vrot.lane.b32.xlu0 %v1259_v40, %s2436_s27 }
 0x24a   :  { %2319 = vmatpush3.bf16.msra.mxu1 %v2676_v39 }
 0x24b   :  { %1750 = vrot.lane.b32.xlu1 %v1342_v41, %s2436_s27  ;;  %2187 = vmatprep.subr.mxu1 %v2426_v8 }
 0x24e   :  { %2188 = vmatpush3.msk.msra.mxu1 %vm46_vm0, %v1963_v44 }
 0x24f   :  { %2190 = vmatmul.mubr.msk.f32.vlgmr.msra.gmra.mrb[12].mxu1 %vm1092_vm7, %v1176_v38  ;;  %2320 = vmatprep.subr.bf16.mxu1 %v2423_v2 }
 0x250   :  { %2322 = vmatpush3.bf16.msra.mxu1 %v2692_v45  ;;  %2202 = vmatprep.mubr.msk.f32.mxu1 %vm2425_vm3, %v2426_v8 }
 0x251   :  { %2323 = vmatprep.subr.bf16.mxu1 %v2423_v2 }
 0x254   :  { %2325 = vmatpush3.bf16.msra.mxu1 %v2324_v48 }
 0x255   :  { %2200 = vmatprep.subr.mxu1 %v2426_v8 }
 0x258   :  { %2201 = vmatpush3.msk.msra.mxu1 %vm46_vm0, %v1970_v51 }
 0x259   :  { %2203 = vmatmul.mubr.msk.f32.vlgmr.msra.gmra.mrb[12].mxu1 %vm1092_vm7, %v1259_v40  ;;  %2326 = vmatprep.subr.bf16.mxu1 %v2423_v2 }
 0x25a   :  { %2328 = vmatpush3.bf16.msra.mxu1 %v2327_v52  ;;  %2215 = vmatprep.mubr.msk.f32.mxu1 %vm2425_vm3, %v2426_v8 }
 0x25b   :  { %2329 = vmatprep.subr.bf16.mxu1 %v2423_v2 }
 0x25e   :  { %2331 = vmatpush3.bf16.msra.mxu1 %v2330_v55 }
 0x25f   :  { %2213 = vmatprep.subr.mxu1 %v2426_v8 }
 0x262   :  { %2214 = vmatpush3.msk.msra.mxu1 %vm46_vm0, %v1977_v56 }
 0x263   :  { %2216 = vmatmul.mubr.msk.f32.vlgmr.msra.gmra.mrb[12].mxu1 %vm1092_vm7, %v1342_v41  ;;  %2362 = vmatprep.subr.bf16.mxu1 %v2423_v2 }
 0x264   :  { %2364 = vmatpush3.bf16.msra.mxu1 %v2333_v28  ;;  %2289 = vmatprep.mubr.msk.f32.mxu1 %vm2425_vm3, %v2426_v8 }
 0x265   :  { %2365 = vmatprep.subr.bf16.mxu1 %v2423_v2 }
 0x268   :  { %2367 = vmatpush3.bf16.msra.mxu1 %v2336_v60 }
 0x2b7   :  { %v1502_v5 = vpop.permute.xlu0 %1501 }
 0x2bb   :  { %v1668_v7 = vpop.permute.xlu0 %1667 }
 0x336   :  { %v1414_v62 = vpop.f32.mrb[12].mxu1 }
 0x337   :  { %v2368_v0 = vadd.f32 %v1414_v62, %v1081_v61  ;;  %v2217_v1 = vpop.f32.mrb[13].mxu1 }
 0x339   :  { %v1419_v3 = vmax.f32 %v2368_v0, 0.0 }
 0x33b   :  { %2227 = vmatmul.mubr.msk.f32.vlgmr.msra.gmra.mrb[14].mxu0 %vm1420_vm8, %v1419_v3 }
 0x33c   :  { %2340 = vmatpush3.bf16.msra.mxu0 %v2634_v58  ;;  %2239 = vmatprep.mubr.msk.f32.mxu0 %vm2425_vm3, %v2426_v8  ;;  %v1987_v58 = vld [vmem:[%s2815_s5 + $0x48] sm:$0x1]  ;;  %s2437_s5 = smov [#allocation2]  }
 0x33d   :  { %2341 = vmatprep.subr.bf16.mxu0 %v2423_v2  ;;  %s1909_s14 = sshll.u32 %s2437_s5, 4  ;;  %s1910_s14 = int_to_ptr.vmem [resolvable:$true] %s1909_s14 }
 0x33e   :  { %s2399_s15 = scalar_lea.vmem %s1910_s14, 32  ;;  %p2404_p1 = scmp.lt.s32.totalorder %s1910_s14, %s1910_s14 }
 0x33f   :  { %p2400_p0 = scmp.ne.s32.totalorder %s1910_s14, %s2399_s15  ;;  %p2405_p2 = scmp.lt.s32.totalorder %s2399_s15, %s2399_s15 }
 0x340   :  { %2343 = vmatpush3.bf16.msra.mxu0 %v2644_v63  ;;  %v1585_v63 = vpop.permute.xlu1 %1584 }
 0x341   :  { %2237 = vmatprep.subr.mxu0 %v2426_v8  ;;  %p2406_p3 = por %p2405_p2, %p2404_p1 }
 0x343   :  { %p2407_p4 = pnand %p2406_p3, %p2400_p0 }
 0x344   :  { %2238 = vmatpush3.msk.msra.mxu0 %vm46_vm0, %v1500_v4  ;;  %v1751_v10 = vpop.permute.xlu1 %1750 }
 0x345   :  { %2240 = vmatmul.mubr.msk.f32.vlgmr.msra.gmra.mrb[16].mxu0 %vm1092_vm7, %v1502_v5  ;;  %2344 = vmatprep.subr.bf16.mxu0 %v2423_v2 }
 0x346   :  { %2346 = vmatpush3.bf16.msra.mxu0 %v2666_v34  ;;  %2252 = vmatprep.mubr.msk.f32.mxu0 %vm2425_vm3, %v2426_v8 }
 0x347   :  { %2347 = vmatprep.subr.bf16.mxu0 %v2423_v2 }
 0x34a   :  { %2349 = vmatpush3.bf16.msra.mxu0 %v2676_v39 }
 0x34b   :  { %2250 = vmatprep.subr.mxu0 %v2426_v8 }
 0x34e   :  { %2251 = vmatpush3.msk.msra.mxu0 %vm46_vm0, %v1987_v58 }
 0x34f   :  { %2253 = vmatmul.mubr.msk.f32.vlgmr.msra.gmra.mrb[16].mxu0 %vm1092_vm7, %v1585_v63  ;;  %2350 = vmatprep.subr.bf16.mxu0 %v2423_v2 }
 0x350   :  { %2352 = vmatpush3.bf16.msra.mxu0 %v2692_v45  ;;  %2265 = vmatprep.mubr.msk.f32.mxu0 %vm2425_vm3, %v2426_v8 }
 0x351   :  { %2353 = vmatprep.subr.bf16.mxu0 %v2423_v2 }
 0x354   :  { %2355 = vmatpush3.bf16.msra.mxu0 %v2324_v48 }
 0x355   :  { %2263 = vmatprep.subr.mxu0 %v2426_v8 }
 0x358   :  { %2264 = vmatpush3.msk.msra.mxu0 %vm46_vm0, %v1994_v6 }
 0x359   :  { %2266 = vmatmul.mubr.msk.f32.vlgmr.msra.gmra.mrb[16].mxu0 %vm1092_vm7, %v1668_v7  ;;  %2356 = vmatprep.subr.bf16.mxu0 %v2423_v2 }
 0x35a   :  { %2358 = vmatpush3.bf16.msra.mxu0 %v2327_v52  ;;  %2278 = vmatprep.mubr.msk.f32.mxu0 %vm2425_vm3, %v2426_v8 }
 0x35b   :  { %2359 = vmatprep.subr.bf16.mxu0 %v2423_v2 }
 0x35e   :  { %2361 = vmatpush3.bf16.msra.mxu0 %v2330_v55 }
 0x35f   :  { %2276 = vmatprep.subr.mxu0 %v2426_v8 }
 0x362   :  { %2277 = vmatpush3.msk.msra.mxu0 %vm46_vm0, %v2001_v9 }
 0x363   :  { %2279 = vmatmul.mubr.msk.f32.vlgmr.msra.gmra.mrb[16].mxu0 %vm1092_vm7, %v1751_v10 }
 0x40e   :  { %v1490_v12 = vpop.f32.mrb[14].mxu0 }
 0x40f   :  { %v1491_v13 = vadd.f32 %v1490_v12, %v1086_v11  ;;  %v2228_v2 = vpop.f32.mrb[15].mxu0 }
 0x411   :  { %1495 = vst.msk [vmem:[#allocation2] sm:$0x1] %vm1494_vm9, %v1491_v13 }
 0x436   :  { %v1823_v14 = vpop.f32.mrb[16].mxu0 }
 0x437   :  { %v2369_v8 = vadd.f32 %v1823_v14, %v1081_v61  ;;  %v2280_v15 = vpop.f32.mrb[17].mxu0 }
 0x439   :  { %v1828_v16 = vmax.f32 %v2369_v8, 0.0 }
 0x43b   :  { %2290 = vmatmul.mubr.msk.f32.vlgmr.msra.gmra.mrb[14].mxu1 %vm1420_vm8, %v1828_v16 }
 0x50e   :  { %v1898_v17 = vpop.f32.mrb[14].mxu1 }
 0x50f   :  { %v1899_v18 = vadd.f32 %v1898_v17, %v1086_v11  ;;  %v2291_v19 = vpop.f32.mrb[15].mxu1 }
 0x511   :  { %1902 = vst.msk [vmem:[#allocation2 + $0x1] sm:$0x1] %vm1494_vm9, %v1899_v18 }
 0x512   :  { %2410 = shalt.err (!%p2407_p4)
}
 0x513   :  { %s2411_s17 = scalar_lea.hbm %s2819_s9, 32 }
 0x514   :  { %p2412_p5 = scmp.ne.s32.totalorder %s2819_s9, %s2411_s17  ;;  %p2415_p6 = scmp.lt.u32.totalorder %s2411_s17, %s2819_s9 }
 0x516   :  { %p2417_p7 = pnand %p2415_p6, %p2412_p5 }
 0x518   :  { %2420 = shalt.err (!%p2417_p7)
}
 0x519   :  { %1912 = dma.vmem_to_hbm [thread:$0]  %s1910_s14, 32, %s2819_s9, [#allocation3]  }
 0x51a   :  { %2421 = dma.done.wait [#allocation3], 32  }
 0x51b   :  { %2422 = vsyncadd [#allocation3], 4294967264 }
 0x51c   :  { %1916 = vsyncpa [#allocation3], 1 }

</bundles_post_ra>
